<compile_context>
chip_gen: v7x
topology: tpu7x:2x2x1
jax: 0.10.0
libtpu: 0.0.40
codegen_flags: <defaults>
</compile_context>

<pallas_src>
import jax
import jax.numpy as jnp
from jax.experimental import pallas as pl
from jax.experimental.pallas import tpu as pltpu

_LANE = 128


def _sse3d_kernel(x_ref, w_ref, b_ref, o_ref):
    # x_ref / o_ref block: (1, C, TS)   (C on sublanes, TS on lanes)
    # w_ref: (C, 1) f32 in VMEM ; b_ref: (1,) f32 in SMEM
    x = x_ref[0]                                                   # (C, TS)
    # Channel squeeze: f32 accumulate, reduce over the sublane (C) axis.
    s = jnp.sum(x.astype(jnp.float32) * w_ref[...], axis=0, keepdims=True)  # (1, TS)
    gate = jax.nn.sigmoid(s + b_ref[0])                            # (1, TS) f32
    gate_lo = gate.astype(o_ref.dtype)                             # single hoisted cast
    o_ref[0] = x * gate_lo                                         # broadcast over C


def _round_up(x, m):
    return ((x + m - 1) // m) * m


def _cdiv(a, b):
    return -(-a // b)


def _vmem_capacity_bytes():
    """Best-effort per-core VMEM capacity; conservative (v7x) fallback."""
    try:
        info = pltpu.get_tpu_info()
        for name in ("vmem_capacity_bytes", "vmem_bytes", "vmem_capacity"):
            v = getattr(info, name, None)
            if isinstance(v, int) and v > 0:
                return int(v)
    except Exception:
        pass
    return 64 << 20


def _choose_cols_per_tile(cols_total, cols_target, batch):
    """Pick 128-lane columns per block: blocks near the target size, but with a
    step count that keeps both v7x TensorCores busy and balanced (even count,
    last tile not nearly empty).  Extra steps on v5e/v6e cost ~0.35us each."""
    n_target = max(1, _cdiv(cols_total, max(1, cols_target)))
    hi = min(cols_total, max(2 * n_target, n_target + 8))
    best_t, best_key = cols_total, None
    for n in range(n_target, hi + 1):
        t = _cdiv(cols_total, n)
        eff = _cdiv(cols_total, t)
        steps = batch * eff
        last = cols_total - t * (eff - 1)
        key = (
            0 if (steps >= 2 or batch * cols_total < 2) else 1,  # feed both TCs
            0 if (steps % 2 == 0 or steps >= 16) else 1,          # 2-TC balance
            0 if (2 * last >= t) else 1,                          # last tile >= half full
            eff,                                                  # then fewest steps
        )
        if best_key is None or key < best_key:
            best_key, best_t = key, t
    return best_t


def spatial_se_3d(x, weight, bias, *, target_block_bytes=None):
    """out = x * sigmoid(conv1x1x1(x)).  x: (B, C, D, H, W); weight: (C,); bias: ()."""
    B, C, D, H, W = x.shape
    S = D * H * W
    itemsize = jnp.dtype(x.dtype).itemsize

    vmem_cap = _vmem_capacity_bytes()
    if target_block_bytes is None:
        # ~2 MiB tiles already hit ~85% of the HBM roofline; go larger where VMEM
        # is plentiful (v5e/v6e: 128 MiB) and stay at 2 MiB on v7x (64 MiB).
        target_block_bytes = (4 << 20) if vmem_cap >= (96 << 20) else (2 << 20)

    # Sublane tile height for this dtype (f32: 8, bf16: 16, int8/fp8: 32); C sits
    # on the sublane axis of the block so its VMEM footprint pads up to this.
    sub_tile = max(1, (8 * 4) // itemsize)
    c_pad = _round_up(C, sub_tile)

    cols_total = _cdiv(S, _LANE)
    cols_target = max(1, target_block_bytes // (c_pad * _LANE * itemsize))
    t_cols = _choose_cols_per_tile(cols_total, cols_target, B)
    n_tiles = _cdiv(cols_total, t_cols)
    # Single tile: use the full extent (always legal, even if S % 128 != 0).
    TS = S if n_tiles == 1 else t_cols * _LANE

    # VMEM budget: 2x in-block + 2x out-block (double-buffered) + f32 temporaries
    # (channel product, gate) + slack; capped well below v7x's 64 MiB physical VMEM.
    blk_cols = _cdiv(TS, _LANE)
    blk_vmem = c_pad * blk_cols * _LANE * itemsize
    f32_tmp = (_round_up(C, 8) + 2) * blk_cols * _LANE * 4
    need = 4 * blk_vmem + 2 * f32_tmp + (1 << 20)
    vmem_limit = int(min(48 << 20, (vmem_cap * 3) // 4, max(32 << 20, 2 * need)))

    x3 = x.reshape(B, C, S)                                # contiguous view, no copy
    w_col = jnp.asarray(weight, jnp.float32).reshape(C, 1)
    b_vec = jnp.asarray(bias, jnp.float32).reshape(1)

    cost = pl.CostEstimate(
        flops=B * S * (2 * C + 2),
        transcendentals=B * S,
        bytes_accessed=2 * B * C * S * itemsize,
    )

    out3 = pl.pallas_call(
        _sse3d_kernel,
        out_shape=jax.ShapeDtypeStruct((B, C, S), x.dtype),
        grid_spec=pltpu.PrefetchScalarGridSpec(
            num_scalar_prefetch=0,
            grid=(B, n_tiles),
            in_specs=[
                pl.BlockSpec((1, C, TS), lambda b, s: (b, 0, s)),
                pl.BlockSpec(memory_space=pltpu.MemorySpace.VMEM),   # weight (C, 1)
                pl.BlockSpec(memory_space=pltpu.MemorySpace.SMEM),   # bias (1,)
            ],
            out_specs=pl.BlockSpec((1, C, TS), lambda b, s: (b, 0, s)),
        ),
        compiler_params=pltpu.CompilerParams(
            dimension_semantics=("parallel", "parallel"),
            vmem_limit_bytes=vmem_limit,
        ),
        cost_estimate=cost,
    )(x3, w_col, b_vec)

    return out3.reshape(B, C, D, H, W)


def _reference(x, weight, bias):
    # Pure-JAX reference of the PyTorch forward (default conv path).
    s = jnp.einsum("bcdhw,c->bdhw", x, weight) + bias
    return x * jax.nn.sigmoid(s)[:, None, :, :, :]


def _run_case(key, shape):
    B, C, D, H, W = shape
    kx, kw, kb = jax.random.split(key, 3)
    x = jax.random.normal(kx, shape, dtype=jnp.float32)
    # nn.Conv3d(C, 1, 1) params: weight (1,C,1,1,1) -> (C,), bias (1,) -> scalar.
    bound = 1.0 / (C ** 0.5)
    weight = jax.random.uniform(kw, (C,), jnp.float32, -bound, bound)
    bias = jax.random.uniform(kb, (), jnp.float32, -bound, bound)

    out = jax.block_until_ready(spatial_se_3d(x, weight, bias))
    ref = _reference(x, weight, bias)
    assert out.shape == shape
    assert jnp.allclose(out, ref, atol=1e-5, rtol=1e-5)


if __name__ == "__main__":
    key = jax.random.PRNGKey(0)
    k1, k2 = jax.random.split(key)

    # Main case: S = 512 (multiple of 128).
    _run_case(k1, (2, 4, 8, 8, 8))
    # Ragged case: C not a multiple of 8 and S = 585 (not a multiple of 128),
    # exercising the masked edge block (no host-side pad / slice).
    _run_case(k2, (1, 3, 5, 9, 13))

    print("KERNEL_OK")
</pallas_src>

<mosaic_0001>
module attributes {stable_mosaic.version = 11 : i64} {
  func.func @_sse3d_kernel(%arg0: i32, %arg1: i32, %arg2: memref<1x4x512xf32, #tpu.memory_space<vmem>>, %arg3: memref<4x1xf32, #tpu.memory_space<vmem>>, %arg4: memref<1xf32, #tpu.memory_space<smem>>, %arg5: memref<1x4x512xf32, #tpu.memory_space<vmem>>) attributes {dimension_semantics = [#tpu.dimension_semantics<parallel>, #tpu.dimension_semantics<parallel>], iteration_bounds = array<i64: 2, 1>, scalar_prefetch = 0 : i64, scratch_operands = 0 : i64, tpu.core_type = #tpu.core_type<tc>, window_params = [{transform_indices = @transform_0, window_bounds = array<i64: 1, 4, 512>}, {pipeline_mode = #tpu.pipeline_mode<synchronous>, transform_indices = @transform_1, window_bounds = array<i64: 4, 1>}, {transform_indices = @transform_2, window_bounds = array<i64: 1>}, {transform_indices = @transform_3, window_bounds = array<i64: 1, 4, 512>}]} {
    %c0 = arith.constant 0 : index
    %c0_0 = arith.constant 0 : index
    %c0_1 = arith.constant 0 : index
    %0 = vector.load %arg2[%c0, %c0_0, %c0_1] : memref<1x4x512xf32, #tpu.memory_space<vmem>>, vector<1x4x512xf32>
    %1 = vector.shape_cast %0 : vector<1x4x512xf32> to vector<4x512xf32>
    %c0_2 = arith.constant 0 : index
    %c0_3 = arith.constant 0 : index
    %2 = vector.load %arg3[%c0_2, %c0_3] : memref<4x1xf32, #tpu.memory_space<vmem>>, vector<4x1xf32>
    %3 = vector.broadcast %2 : vector<4x1xf32> to vector<4x512xf32>
    %4 = arith.mulf %1, %3 : vector<4x512xf32>
    %cst = arith.constant dense<0.000000e+00> : vector<512xf32>
    %5 = vector.multi_reduction <add>, %4, %cst [0] : vector<4x512xf32> to vector<512xf32>
    %6 = vector.shape_cast %5 : vector<512xf32> to vector<1x512xf32>
    %c0_4 = arith.constant 0 : index
    %7 = memref.load %arg4[%c0_4] : memref<1xf32, #tpu.memory_space<smem>>
    %8 = vector.broadcast %7 : f32 to vector<1x512xf32>
    %9 = arith.addf %6, %8 : vector<1x512xf32>
    %10 = arith.negf %9 : vector<1x512xf32>
    %11 = math.exp %10 : vector<1x512xf32>
    %cst_5 = arith.constant 1.000000e+00 : f32
    %12 = vector.broadcast %cst_5 : f32 to vector<1x512xf32>
    %13 = arith.addf %12, %11 : vector<1x512xf32>
    %14 = arith.divf %12, %13 : vector<1x512xf32>
    %15 = vector.broadcast %14 : vector<1x512xf32> to vector<4x512xf32>
    %16 = arith.mulf %1, %15 : vector<4x512xf32>
    %c0_6 = arith.constant 0 : index
    %c0_7 = arith.constant 0 : index
    %c0_8 = arith.constant 0 : index
    %17 = vector.load %arg5[%c0_6, %c0_7, %c0_8] : memref<1x4x512xf32, #tpu.memory_space<vmem>>, vector<1x4x512xf32>
    %18 = vector.shape_cast %17 : vector<1x4x512xf32> to vector<4x512xf32>
    %19 = vector.shape_cast %16 : vector<4x512xf32> to vector<1x4x512xf32>
    tpu.vector_store %arg5[%c0_6, %c0_7, %c0_8], %19 {strides = array<i32>} : memref<1x4x512xf32, #tpu.memory_space<vmem>>, vector<1x4x512xf32>,
    return
  }
  func.func @transform_0(%arg0: i32, %arg1: i32) -> (i32, i32, i32) {
    %c0_i32 = arith.constant 0 : i32
    %c0_i32_0 = arith.constant 0 : i32
    return %arg0, %c0_i32, %arg1 : i32, i32, i32
  }
  func.func @transform_1(%arg0: i32, %arg1: i32) -> (i32, i32) {
    %c0_i32 = arith.constant 0 : i32
    %c0_i32_0 = arith.constant 0 : i32
    %c0_i32_1 = arith.constant 0 : i32
    return %c0_i32, %c0_i32_0 : i32, i32
  }
  func.func @transform_2(%arg0: i32, %arg1: i32) -> i32 {
    %c0_i32 = arith.constant 0 : i32
    %c0_i32_0 = arith.constant 0 : i32
    return %c0_i32 : i32
  }
  func.func @transform_3(%arg0: i32, %arg1: i32) -> (i32, i32, i32) {
    %c0_i32 = arith.constant 0 : i32
    %c0_i32_0 = arith.constant 0 : i32
    return %arg0, %c0_i32, %arg1 : i32, i32, i32
  }
}

</mosaic_0001>

<bundles_post_ra>
// kernel: tpu_custom_call.1
= control target key start
LH: loop header
LB: loop body
LE: loop exit
PB: predicated region body
PF: predicated region fallthrough
CT: control target
= control target key end

     0   :  { %s833_s0 = inlined_call_operand.hbm [shape: f32[2,4,512], index: 0, kind: input, shape index: {}]   ;;  %s834_s1 = inlined_call_operand.vmem [shape: f32[4,1], index: 1, kind: input, shape index: {}]   ;;  %s835_s2 = inlined_call_operand.<no memory space> [shape: f32[1], index: 2, kind: input, shape index: {}]   ;;  %s836_s3 = inlined_call_operand.hbm [shape: f32[2,4,512], index: 3, kind: output, shape index: {}]  }
   0x1   :  { %8 = sst [smem:[#allocation2]] %s835_s2 }
   0x2   :  { %9 = vsyncpa [#allocation4], 0 }
   0x3   :  { %11 = vsyncpa [#allocation4 + $0x1], 0 }
   0x4   :  { %12 = vsyncpa [#allocation5], 0 }
   0x5   :  { %14 = vsyncpa [#allocation5 + $0x1], 0  ;;  %s646_s14 = smov 0   ;;  %s648_s15 = smov 0  }
   0x6   :  { %s650_s16 = smov 0   ;;  %s652_s17 = smov 0  }
   0x7   :  { %s654_s18 = smov 0   ;;  %s656_s19 = smov 0  }
   0x8 LB: > { %s403_s2 = sadd.s32 4294967295, %s617_s19   ;;  %s404_s20 = sadd.s32 4294967294, %s617_s19   ;;  %s617_s19 = sphi %s656_s19, %s20_s19   ;;  %s613_s18 = sphi %s654_s18, %s852_s18   ;;  %s609_s17 = sphi %s652_s17, %s851_s17   ;;  %s605_s16 = sphi %s650_s16, %s850_s16   ;;  %s601_s15 = sphi %s648_s15, %s849_s15   ;;  %s597_s14 = sphi %s646_s14, %s848_s14  }
   0x9   : > { %s32_s21 = sadd.s32 1, %s613_s18  ;;  %s41_s22 = sadd.s32 1, %s605_s16 }
   0xa   : > { %p34_p0 = scmp.ge.s32.totalorder %s32_s21, 2  ;;  %p48_p1 = scmp.ne.s32.totalorder %s605_s16, %s601_s15 }
   0xb   : > { %p49_p2 = scmp.eq.s32.totalorder %s617_s19, 0  ;;  %p54_p3 = scmp.ne.s32.totalorder %s601_s15, %s597_s14 }
   0xc   : > { %s854_s21 = smov (%p34_p0, %s32_s21), 0  ;;  %p55_p5 = scmp.eq.s32.totalorder %s403_s2, 0 }
   0xd   : > { %p687_p4 = por %p49_p2, %p48_p1  ;;  %s36_s24 = ssub.s32 %s613_s18, %s854_s21 }
   0xe   : > { %p122_p6 = scmp.eq.s32.totalorder %s403_s2, 1  ;;  %p39_p7 = scmp.eq.s32.totalorder %s36_s24, 0 }
   0xf   : > { %p693_p8 = por %p55_p5, %p54_p3  ;;  %p128_p10 = scmp.eq.s32.totalorder %s404_s20, 1 }
  0x10   : > { %p697_p9 = por %p122_p6, %p48_p1  ;;  %p436_p13 = scmp.lt.s32.totalorder %s617_s19, 2 }
  0x11   : > { %s702_s27 = scalar_select %p39_p7, %s605_s16, %s41_s22  }
  0x12   : > { %s840_s26 = scalar_select %p697_p9, 1, 0 }
  0x13   : > { %p704_p11 = por %p128_p10, %p54_p3  ;;  %s154_s29 = sand.u32 1, %s605_s16  }
  0x14   : > { %s407_s30 = sshll.u32 %s154_s29, 4  ;;  %s422_s4 = sshll.u32 %s613_s18, 8 }
  0x15   : > { %s841_s28 = scalar_select %p704_p11, 1, 0 }
  0x16   : > { %s715_s7 = scalar_lea.hbm %s833_s0, %s422_s4  ;;  %s158_s8 = scalar_lea.vmem [#allocation3], %s407_s30 }
  0x17   : > { %s168_s9 = sshll.u32 %s158_s8, 4  ;;  %p721_p0 = pnand %p436_p13, %p687_p4  ;;  %s717_s9 = int_to_ptr.vmem [resolvable:$true] %s168_s9 }
  0x18   : > { %s155_s11 = scalar_lea.sflag [#allocation4], %s154_s29  ;;  %s505_s12 = scalar_lea.hbm %s715_s7, 256 }
  0x19   : > { %p506_p3 = scmp.ne.s32.totalorder %s715_s7, %s505_s12  ;;  %p507_p5 = pneg %p721_p0 }
  0x1a   : > { %s510_s20 = scalar_lea.hbm %s833_s0, 512  ;;  %p511_p4 = scmp.lt.u32.totalorder %s715_s7, %s833_s0 }
  0x1b   : > { %p508_p6 = pnand %p507_p5, %p506_p3  ;;  %p512_p10 = scmp.lt.u32.totalorder %s510_s20, %s505_s12 }
  0x1c   : > { %p514_p12 = scmp.lt.u32.totalorder %s505_s12, %s715_s7 }
  0x1d   : > { %p509_p7 = pneg %p508_p6  ;;  %p513_p13 = por %p512_p10, %p511_p4 }
  0x1f   : > { %p515_p1 = por %p514_p12, %p513_p13 }
  0x21   : > { %p516_p2 = pnand %p515_p1, %p509_p7 }
  0x23   : > { %519 = shalt.err (!%p516_p2)
}
  0x24   : > { %s520_s24 = scalar_lea.vmem %s717_s9, 256  ;;  %s619_s29 = smov [#allocation3]  }
  0x25   : > { %p521_p3 = scmp.ne.s32.totalorder %s717_s9, %s520_s24  ;;  %s525_s30 = sshll.u32 %s619_s29, 4  ;;  %s526_s30 = int_to_ptr.vmem [resolvable:$false] %s525_s30 }
  0x26   : > { %s527_s4 = scalar_lea.vmem %s526_s30, 512  ;;  %p528_p9 = scmp.lt.s32.totalorder %s717_s9, %s526_s30 }
  0x27   : > { %p523_p6 = pnand %p521_p3, %p507_p5  ;;  %p529_p4 = scmp.lt.s32.totalorder %s527_s4, %s520_s24 }
  0x29   : > { %p524_p11 = pneg %p523_p6  ;;  %p530_p10 = por %p529_p4, %p528_p9 }
  0x2b   : > { %p531_p12 = pnand %p530_p10, %p524_p11 }
  0x2d   : > { %534 = shalt.err (!%p531_p12)
}
  0x2e   : > { %431 = dma.hbm_to_vmem [thread:$0]  (!%p721_p0), %s715_s7, 256, %s717_s9, %s155_s11  }
  0x2f   : > { %p843_p1 = scmp.lt.s32.totalorder %s617_s19, 3  ;;  %p844_p2 = scmp.ge.s32.totalorder %s617_s19, 1 }
  0x31   : > { %p174_p5 = pnand %p844_p2, %p843_p1 }
  0x32   : > { %s757_s5 = sand.u32 (!%p174_p5), 1, %s601_s15  }
  0x33   : > { %177 = sbr.rel (%p174_p5) target bundleno = 255 (0xff), region = 32  ;;  %s411_s6 = sshll.u32 (!%p174_p5), %s757_s5, 4 }
  0x34   : > { %s180_s8 = scalar_lea.sflag (!%p174_p5), [#allocation4], %s757_s5  ;;  %s183_s10 = scalar_lea.vmem (!%p174_p5), [#allocation3], %s411_s6 }
  0x3a   : > { %588 = dma.done.wait (%p693_p8), %s180_s8, 256  }
  0x3b   : > { %590 = vsyncadd (%p693_p8), %s180_s8, 4294967040  ;;  %v620_v0 = vmov 0   ;;  %v210_v1 = vld [vmem:[%s834_s1] sm:$0xf]  ;;  %v621_v2 = vmov 839922192   ;;  %v218_v4 = vlaneseq }
  0x3c   : > { %488 = vset.pattern.permute.xlu0 %v620_v0  ;;  %v216_v3 = vunpack.c.l.s4 %v621_v2  ;;  %v770_v9 = vld [vmem:[%s183_s10] sm:$0xff]  ;;  %v772_v10 = vld [vmem:[%s183_s10 + $0x8] sm:$0xff]  ;;  %vm231_vm0 = vcmask 1043456   ;;  %s260_s25 = sld [smem:[#allocation2]]  ;;  %s423_s11 = sshll.u32 %s609_s17, 8 }
  0x3d   : > { %213 = vperm.xlu0 %488, %v210_v1   ;;  %v219_v6 = vshrl.u32 %v218_v4, 7  ;;  %s205_s12 = scalar_lea.vmem [#allocation6], %s411_s6  ;;  %s784_s22 = scalar_lea.hbm %s836_s3, %s423_s11 }
  0x3e   : > { %v217_v5 = vunpack.c.0.s8 %v216_v3  ;;  %s319_s13 = sshll.u32 %s205_s12, 4  ;;  %s303_s17 = scalar_lea.sflag [#allocation5], %s757_s5  ;;  %s786_s13 = int_to_ptr.vmem [resolvable:$true] %s319_s13 }
  0x3f   : > { %s535_s23 = scalar_lea.vmem %s786_s13, 256  ;;  %p845_p9 = scmp.ne.s32.totalorder %s840_s26, 0 }
  0x40   : > { %v220_v7 = vsub.s32 %v217_v5, %v219_v6  ;;  %p536_p8 = scmp.ne.s32.totalorder %s786_s13, %s535_s23  ;;  %s622_s24 = smov [#allocation6]  }
  0x41   : > { %s539_s29 = sshll.u32 %s622_s24, 4  ;;  %s540_s29 = int_to_ptr.vmem [resolvable:$false] %s539_s29 }
  0x42   : > { %v261_v38 = vstv %s260_s25  ;;  %p537_p11 = pnand %p536_p8, %p845_p9  ;;  %s541_s30 = scalar_lea.vmem %s540_s29, 512 }
  0x43   : > { %p542_p7 = scmp.lt.s32.totalorder %s786_s13, %s540_s29  ;;  %p543_p13 = scmp.lt.s32.totalorder %s541_s30, %s535_s23 }
  0x44   : > { %p538_p0 = pneg %p537_p11 }
  0x45   : > { %p544_p3 = por %p543_p13, %p542_p7 }
  0x47   : > { %p545_p6 = pnand %p544_p3, %p538_p0 }
  0xbc   : > { %v214_v8 = vpop.permute.xlu0 %213 }
  0xbd   : > { %v221_v11 = vrot.slane %v214_v8, %v220_v7 }
  0xbf   : > { %v223_v12 = vmul.f32 %v221_v11, %v770_v9  ;;  %v224_v13 = vmul.f32 %v221_v11, %v772_v10 }
  0xc1   : > { %v227_v14 = vcombine.high %v223_v12, %v223_v12  ;;  %v228_v15 = vcombine.high %v224_v13, %v224_v13  ;;  %v232_v16 = vsel %vm231_vm0, %v223_v12, 0.0  ;;  %v246_v17 = vsel %vm231_vm0, %v224_v13, 0.0 }
  0xc2   : > { %v233_v18 = vrot.slane %v232_v16, 4  ;;  %v247_v19 = vrot.slane %v246_v17, 4 }
  0xc3   : > { %v239_v20 = vsel %vm231_vm0, %v227_v14, 0.0  ;;  %v253_v21 = vsel %vm231_vm0, %v228_v15, 0.0 }
  0xc4   : > { %v234_v22 = vadd.f32 %v233_v18, %v232_v16  ;;  %v240_v23 = vrot.slane %v239_v20, 4  ;;  %v248_v24 = vadd.f32 %v247_v19, %v246_v17  ;;  %v254_v25 = vrot.slane %v253_v21, 4 }
  0xc6   : > { %v235_v26 = vrot.slane %v234_v22, 2  ;;  %v241_v27 = vadd.f32 %v240_v23, %v239_v20  ;;  %v249_v28 = vrot.slane %v248_v24, 2  ;;  %v255_v29 = vadd.f32 %v254_v25, %v253_v21 }
  0xc8   : > { %v236_v30 = vadd.f32 %v235_v26, %v234_v22  ;;  %v242_v31 = vrot.slane %v241_v27, 2  ;;  %v250_v32 = vadd.f32 %v249_v28, %v248_v24  ;;  %v256_v33 = vrot.slane %v255_v29, 2 }
  0xca   : > { %v237_v34 = vrot.slane %v236_v30, 1  ;;  %v243_v35 = vadd.f32 %v242_v31, %v241_v27  ;;  %v251_v36 = vrot.slane %v250_v32, 1  ;;  %v257_v37 = vadd.f32 %v256_v33, %v255_v29 }
  0xcc   : > { %v238_v39 = vadd.f32 %v237_v34, %v236_v30  ;;  %v244_v40 = vrot.slane %v243_v35, 1  ;;  %v252_v41 = vadd.f32 %v251_v36, %v250_v32  ;;  %v258_v42 = vrot.slane %v257_v37, 1 }
  0xce   : > { %v245_v43 = vadd.f32 %v244_v40, %v243_v35  ;;  %v259_v44 = vadd.f32 %v258_v42, %v257_v37  ;;  %v262_v45 = vadd.f32 %v261_v38, %v238_v39  ;;  %v264_v46 = vadd.f32 %v261_v38, %v252_v41 }
  0xd0   : > { %v263_v47 = vadd.f32 %v261_v38, %v245_v43  ;;  %v265_v48 = vadd.f32 %v261_v38, %v259_v44  ;;  %v413_v49 = vmul.f32 -1.442695, %v262_v45  ;;  %v415_v50 = vmul.f32 -1.442695, %v264_v46 }
  0xd2   : > { %489 = vpow2.f32 %v413_v49  ;;  %v414_v51 = vmul.f32 -1.442695, %v263_v47  ;;  %v416_v52 = vmul.f32 -1.442695, %v265_v48 }
  0xd3   : > { %491 = vpow2.f32 %v415_v50 }
  0xd4   : > { %493 = vpow2.f32 %v414_v51 }
  0xd5   : > { %495 = vpow2.f32 %v416_v52 }
  0xdc   : > { %v490_v53 = vpop.eup %489 }
  0xdd   : > { %v492_v54 = vpop.eup %491  ;;  %v278_v55 = vadd.f32 1.0, %v490_v53 }
  0xde   : > { %v494_v56 = vpop.eup %493  ;;  %v280_v57 = vadd.f32 1.0, %v492_v54 }
  0xdf   : > { %v496_v58 = vpop.eup %495  ;;  %v279_v59 = vadd.f32 1.0, %v494_v56  ;;  %497 = vrcp.f32 %v278_v55 }
  0xe0   : > { %v281_v60 = vadd.f32 1.0, %v496_v58  ;;  %499 = vrcp.f32 %v280_v57 }
  0xe1   : > { %501 = vrcp.f32 %v279_v59 }
  0xe2   : > { %503 = vrcp.f32 %v281_v60 }
  0xe9   : > { %v498_v61 = vpop.eup %497 }
  0xea   : > { %v500_v62 = vpop.eup %499 }
  0xeb   : > { %v502_v63 = vpop.eup %501 }
  0xec   : > { %v504_v0 = vpop.eup %503  ;;  %v294_v1 = vcombine.low %v498_v61, %v502_v63 }
  0xed   : > { %v295_v2 = vcombine.low %v500_v62, %v504_v0 }
  0xee   : > { %v298_v3 = vmul.f32 %v294_v1, %v770_v9 }
  0xef   : > { %v299_v4 = vmul.f32 %v295_v2, %v772_v10 }
  0xf0   : > { %300 = vst [vmem:[%s205_s12] sm:$0xff] %v298_v3 }
  0xf1   : > { %301 = vst [vmem:[%s205_s12 + $0x8] sm:$0xff] %v299_v4 }
  0xf2   : > { %548 = shalt.err (!%p545_p6)
}
  0xf3   : > { %s549_s4 = scalar_lea.hbm %s784_s22, 256  ;;  %s553_s8 = scalar_lea.hbm %s836_s3, 512 }
  0xf4   : > { %p550_p4 = scmp.ne.s32.totalorder %s784_s22, %s549_s4  ;;  %p554_p1 = scmp.lt.u32.totalorder %s784_s22, %s836_s3 }
  0xf5   : > { %p555_p2 = scmp.lt.u32.totalorder %s553_s8, %s549_s4  ;;  %p557_p8 = scmp.lt.u32.totalorder %s549_s4, %s784_s22 }
  0xf6   : > { %p551_p10 = pnand %p550_p4, %p845_p9 }
  0xf7   : > { %p556_p5 = por %p555_p2, %p554_p1 }
  0xf8   : > { %p552_p12 = pneg %p551_p10 }
  0xf9   : > { %p558_p11 = por %p557_p8, %p556_p5 }
  0xfb   : > { %p559_p0 = pnand %p558_p11, %p552_p12 }
  0xfd   : > { %562 = shalt.err (!%p559_p0)
}
  0xfe   : > { %426 = dma.vmem_to_hbm [thread:$0]  (%p845_p9), %s786_s13, 256, %s784_s22, %s303_s17  }
  0xff PF: > { %s331_s9 = sand.u32 1, %s597_s14   ;;  %p846_p7 = scmp.ne.s32.totalorder %s841_s28, 0 }
 0x100   : > { %p847_p13 = scmp.ge.s32.totalorder %s617_s19, 2  ;;  %s332_s25 = scalar_lea.sflag [#allocation5], %s331_s9 }
 0x102   : > { %p433_p3 = pnand %p847_p13, %p846_p7 }
 0x104   : > { %592 = dma.done.wait (!%p433_p3), %s332_s25, 256  }
 0x105   : > { %594 = vsyncadd (!%p433_p3), %s332_s25, 4294967040  ;;  %s20_s19 = sadd.s32 1, %s617_s19   ;;  %s848_s14 = smov %s601_s15 }
 0x106   : > { %p17_p6 = scmp.ge.s32.totalorder %s20_s19, 4   ;;  %s849_s15 = smov %s605_s16 }
 0x107   : > { %s850_s16 = smov %s702_s27  ;;  %s851_s17 = smov %s613_s18 }
 0x108   : > { %s852_s18 = smov %s854_s21  ;;  %19 = sbr.rel (!%p17_p6) target bundleno = 8 (0x8), region = 77 }
 0x10f   :  { %337 = vsyncpa [#allocation4], 1 }
 0x110   :  { %339 = vsyncpa [#allocation4 + $0x1], 1 }
 0x111   :  { %340 = vsyncpa [#allocation5], 1 }
 0x112   :  { %342 = vsyncpa [#allocation5 + $0x1], 1 }

</bundles_post_ra>
